<compile_context>
chip_gen: v7x
topology: tpu7x:2x2x1
jax: 0.10.0
libtpu: 0.0.40
codegen_flags: <defaults>
</compile_context>

<pallas_src>
import jax
import jax.numpy as jnp
from jax.experimental import pallas as pl
from jax.experimental.pallas import tpu as pltpu


def _bias_add_kernel(x_ref, b_ref, o_ref):
    # x_ref: (TR, TL) tile of the (rows, lanes) view of x
    # b_ref: (TR, 1) per-row bias, broadcast across the lane dim by the VPU add
    o_ref[...] = x_ref[...] + b_ref[...]


def _round_up(v, m):
    return ((v + m - 1) // m) * m


def _pick_tile(padded_dim, unit, max_tile):
    """Largest multiple of `unit` that divides `padded_dim`, capped at max_tile."""
    best = unit
    t = unit
    limit = min(max_tile, padded_dim)
    while t <= limit:
        if padded_dim % t == 0:
            best = t
        t += unit
    return best


def learnable_bias(x, bias):
    """x: (N, C, H, W), bias: (1, C, 1, 1)  ->  x + bias (broadcast over N, H, W)."""
    N, C, H, W = x.shape
    dtype = x.dtype
    itemsize = jnp.dtype(dtype).itemsize
    hw = H * W
    R = N * C

    # Fold N into the sublane axis so small C does not waste vreg sublanes.
    x2 = x.reshape(R, hw)
    # Per-row bias (row r = n*C + c -> bias[c]); cast so the add stays in x.dtype.
    b_row = jnp.tile(bias.reshape(C).astype(dtype), N).reshape(R, 1)

    # Sublane packing factor: 8 rows/vreg for 32-bit, 16 for 16-bit, 32 for 8-bit.
    pack = max(8, 32 // itemsize)

    # Pad rows to `pack`, lanes to 128 (lane-dense, unmasked stores).
    Rp = _round_up(R, pack)
    HWp = _round_up(hw, 128)
    if (Rp, HWp) != (R, hw):
        x2 = jnp.pad(x2, ((0, Rp - R), (0, HWp - hw)))
        b_row = jnp.pad(b_row, ((0, Rp - R), (0, 0)))

    # Lane tile in the 512-2048 sweet spot when possible; row tile up to 256.
    tl = _pick_tile(HWp, 128, 2048)
    tr = _pick_tile(Rp, pack, 256)
    grid = (Rp // tr, HWp // tl)

    tile_bytes = tr * tl * itemsize
    # 2 pipeline buffers x (input + output tile) + bias + headroom.
    vmem_limit = min(64 * 1024 * 1024,
                     max(4 * 1024 * 1024, 4 * tile_bytes + 2 * 1024 * 1024))

    out = pl.pallas_call(
        _bias_add_kernel,
        out_shape=jax.ShapeDtypeStruct((Rp, HWp), dtype),
        grid_spec=pltpu.PrefetchScalarGridSpec(
            num_scalar_prefetch=0,
            grid=grid,
            in_specs=[
                pl.BlockSpec((tr, tl), lambda r, l: (r, l)),
                pl.BlockSpec((tr, 1), lambda r, l: (r, 0)),
            ],
            out_specs=pl.BlockSpec((tr, tl), lambda r, l: (r, l)),
        ),
        compiler_params=pltpu.CompilerParams(
            dimension_semantics=("parallel", "parallel"),
            vmem_limit_bytes=vmem_limit,
        ),
        cost_estimate=pl.CostEstimate(
            flops=R * hw,
            transcendentals=0,
            bytes_accessed=2 * R * hw * itemsize + R * itemsize,
        ),
    )(x2, b_row)

    if (Rp, HWp) != (R, hw):
        out = out[:R, :hw]
    return out.reshape(N, C, H, W)


if __name__ == "__main__":
    key = jax.random.PRNGKey(0)
    kx, kb, kx2, kb2 = jax.random.split(key, 4)

    # Primary small test (matches the module's NCHW layout).
    N, C, H, W = 2, 4, 16, 16
    x = jax.random.normal(kx, (N, C, H, W), dtype=jnp.float32)
    # nn.Parameter initializes to zeros; use non-zero bias so the add is tested.
    bias = jax.random.normal(kb, (1, C, 1, 1), dtype=jnp.float32)

    out = learnable_bias(x, bias)
    jax.block_until_ready(out)
    ref = x + bias
    assert out.shape == x.shape
    assert jnp.allclose(out, ref, atol=1e-6), "mismatch vs reference"

    # Secondary test exercising the padding path (H*W not a multiple of 128,
    # rows not a multiple of 8) and bf16 dtype handling.
    x3 = jax.random.normal(kx2, (2, 3, 7, 7), dtype=jnp.bfloat16)
    b3 = jax.random.normal(kb2, (1, 3, 1, 1), dtype=jnp.float32)
    out3 = learnable_bias(x3, b3)
    jax.block_until_ready(out3)
    ref3 = x3 + b3.astype(jnp.bfloat16)
    assert out3.shape == x3.shape
    assert jnp.allclose(out3.astype(jnp.float32), ref3.astype(jnp.float32),
                        atol=1e-2), "bf16 mismatch vs reference"

    print("KERNEL_OK")
</pallas_src>

<mosaic_0001>
module attributes {stable_mosaic.version = 11 : i64} {
  func.func @_bias_add_kernel(%arg0: i32, %arg1: i32, %arg2: memref<8x256xf32, #tpu.memory_space<vmem>>, %arg3: memref<8x1xf32, #tpu.memory_space<vmem>>, %arg4: memref<8x256xf32, #tpu.memory_space<vmem>>) attributes {dimension_semantics = [#tpu.dimension_semantics<parallel>, #tpu.dimension_semantics<parallel>], iteration_bounds = array<i64: 1, 1>, scalar_prefetch = 0 : i64, scratch_operands = 0 : i64, tpu.core_type = #tpu.core_type<tc>, window_params = [{transform_indices = @transform_0, window_bounds = array<i64: 8, 256>}, {transform_indices = @transform_1, window_bounds = array<i64: 8, 1>}, {transform_indices = @transform_2, window_bounds = array<i64: 8, 256>}]} {
    %c0 = arith.constant 0 : index
    %c0_0 = arith.constant 0 : index
    %0 = vector.load %arg2[%c0, %c0_0] : memref<8x256xf32, #tpu.memory_space<vmem>>, vector<8x256xf32>
    %c0_1 = arith.constant 0 : index
    %c0_2 = arith.constant 0 : index
    %1 = vector.load %arg3[%c0_1, %c0_2] : memref<8x1xf32, #tpu.memory_space<vmem>>, vector<8x1xf32>
    %2 = vector.broadcast %1 : vector<8x1xf32> to vector<8x256xf32>
    %3 = arith.addf %0, %2 : vector<8x256xf32>
    %c0_3 = arith.constant 0 : index
    %c0_4 = arith.constant 0 : index
    %4 = vector.load %arg4[%c0_3, %c0_4] : memref<8x256xf32, #tpu.memory_space<vmem>>, vector<8x256xf32>
    tpu.vector_store %arg4[%c0_3, %c0_4], %3 {strides = array<i32>} : memref<8x256xf32, #tpu.memory_space<vmem>>, vector<8x256xf32>,
    return
  }
  func.func @transform_0(%arg0: i32, %arg1: i32) -> (i32, i32) {
    %c0_i32 = arith.constant 0 : i32
    return %arg0, %arg1 : i32, i32
  }
  func.func @transform_1(%arg0: i32, %arg1: i32) -> (i32, i32) {
    %c0_i32 = arith.constant 0 : i32
    %c0_i32_0 = arith.constant 0 : i32
    return %arg0, %c0_i32 : i32, i32
  }
  func.func @transform_2(%arg0: i32, %arg1: i32) -> (i32, i32) {
    %c0_i32 = arith.constant 0 : i32
    return %arg0, %arg1 : i32, i32
  }
}

</mosaic_0001>

<bundles_post_ra>
// kernel: tpu_custom_call.1
= control target key start
LH: loop header
LB: loop body
LE: loop exit
PB: predicated region body
PF: predicated region fallthrough
CT: control target
= control target key end

     0   :  { %7 = vsyncpa [#allocation3], 0  ;;  %s148_s0 = inlined_call_operand.hbm [shape: f32[8,256], index: 0, kind: input, shape index: {}]   ;;  %s149_s1 = inlined_call_operand.vmem [shape: f32[8,1], index: 1, kind: input, shape index: {}]   ;;  %s150_s2 = inlined_call_operand.hbm [shape: f32[8,256], index: 2, kind: output, shape index: {}]  }
   0x1   :  { %8 = vsyncpa [#allocation4], 0  ;;  %s103_s9 = smov [#allocation2]   ;;  %s55_s13 = scalar_lea.hbm %s148_s0, 256 }
   0x2   :  { %s15_s10 = sshll.u32 %s103_s9, 4  ;;  %p56_p0 = scmp.ne.s32.totalorder %s148_s0, %s55_s13  ;;  %s16_s10 = int_to_ptr.vmem [resolvable:$true] %s15_s10 }
   0x3   :  { %p59_p1 = scmp.lt.u32.totalorder %s55_s13, %s148_s0 }
   0x5   :  { %p61_p2 = pnand %p59_p1, %p56_p0 }
   0x7   :  { %64 = shalt.err (!%p61_p2)
}
   0x8   :  { %s65_s18 = scalar_lea.vmem %s16_s10, 256  ;;  %p70_p4 = scmp.lt.s32.totalorder %s16_s10, %s16_s10 }
   0x9   :  { %p66_p3 = scmp.ne.s32.totalorder %s16_s10, %s65_s18  ;;  %p71_p5 = scmp.lt.s32.totalorder %s65_s18, %s65_s18 }
   0xb   :  { %p72_p6 = por %p71_p5, %p70_p4 }
   0xd   :  { %p73_p7 = pnand %p72_p6, %p66_p3 }
   0xf   :  { %76 = shalt.err (!%p73_p7)
}
  0x10   :  { %18 = dma.hbm_to_vmem [thread:$0]  %s148_s0, 256, %s16_s10, [#allocation3]  }
  0x11   :  { %99 = dma.done.wait [#allocation3], 256  }
  0x12   :  { %100 = vsyncadd [#allocation3], 4294967040  ;;  %v104_v0 = vmov 0   ;;  %v26_v1 = vld [vmem:[%s149_s1] sm:$0xff]  ;;  %v25_v3 = vld [vmem:[#allocation2 + $0x8] sm:$0xff]  ;;  %s105_s23 = smov [#allocation5]  }
  0x13   :  { %54 = vset.pattern.permute.xlu0 %v104_v0  ;;  %v24_v2 = vld [vmem:[#allocation2] sm:$0xff]  ;;  %s42_s24 = sshll.u32 %s105_s23, 4  ;;  %s43_s24 = int_to_ptr.vmem [resolvable:$true] %s42_s24 }
  0x14   :  { %29 = vperm.xlu0 %54, %v26_v1   ;;  %s77_s0 = scalar_lea.vmem %s43_s24, 256  ;;  %p82_p9 = scmp.lt.s32.totalorder %s43_s24, %s43_s24 }
  0x15   :  { %p78_p8 = scmp.ne.s32.totalorder %s43_s24, %s77_s0  ;;  %p83_p10 = scmp.lt.s32.totalorder %s77_s0, %s77_s0 }
  0x17   :  { %p84_p11 = por %p83_p10, %p82_p9 }
  0x19   :  { %p85_p12 = pnand %p84_p11, %p78_p8 }
  0x93   :  { %v30_v4 = vpop.permute.xlu0 %29 }
  0x94   :  { %v32_v5 = vadd.f32 %v30_v4, %v24_v2  ;;  %v33_v6 = vadd.f32 %v30_v4, %v25_v3 }
  0x96   :  { %34 = vst [vmem:[#allocation5] sm:$0xff] %v32_v5  ;;  %35 = vst [vmem:[#allocation5 + $0x8] sm:$0xff] %v33_v6 }
  0x97   :  { %88 = shalt.err (!%p85_p12)
}
  0x98   :  { %s89_s26 = scalar_lea.hbm %s150_s2, 256 }
  0x99   :  { %p90_p13 = scmp.ne.s32.totalorder %s150_s2, %s89_s26  ;;  %p93_p0 = scmp.lt.u32.totalorder %s89_s26, %s150_s2 }
  0x9b   :  { %p95_p1 = pnand %p93_p0, %p90_p13 }
  0x9d   :  { %98 = shalt.err (!%p95_p1)
}
  0x9e   :  { %45 = dma.vmem_to_hbm [thread:$0]  %s43_s24, 256, %s150_s2, [#allocation4]  }
  0x9f   :  { %101 = dma.done.wait [#allocation4], 256  }
  0xa0   :  { %102 = vsyncadd [#allocation4], 4294967040 }
  0xa1   :  { %49 = vsyncpa [#allocation3], 1 }
  0xa2   :  { %50 = vsyncpa [#allocation4], 1 }

</bundles_post_ra>
